<compile_context>
chip_gen: v5e
topology: v5e:2x2
jax: 0.10.0
libtpu: 0.0.40
codegen_flags: <defaults>
</compile_context>

<pallas_src>
import numpy as np
import jax
import jax.numpy as jnp
from jax.experimental import pallas as pl
from jax.experimental.pallas import tpu as pltpu

ROW_TILE_MAX = 512               # flattened frames per grid step (feedback: 512-1024)
COMPUTE_DTYPE = jnp.bfloat16     # MXU / candidate-stream operand dtype; math stays f32


def _round_up(x, m):
    return ((x + m - 1) // m) * m


def _vmem_limit_bytes():
    # Generation-aware VMEM budget (~75% of capacity); safe fallback if query fails.
    try:
        cap = getattr(pltpu.get_tpu_info(), "vmem_capacity_bytes", None)
        if cap:
            return int(cap) * 3 // 4
    except Exception:
        pass
    return 48 * 1024 * 1024


# ------------------------------ fused kernel ------------------------------- #

def _cpc_kernel(nvalid_ref,                 # (P,) int32 — SMEM scalar prefetch
                q_ref,                      # (row_tile, dim1)      bf16 q rows
                cand_ref,                   # (K, row_tile, dim2)   bf16 candidates (0 = positive)
                wc_ref,                     # (dim1, dim2)          bf16 W_comb = (Wq @ Wp^T)*scale
                bc_ref,                     # (1, dim2)             f32  b_comb = (bq @ Wp^T)*scale
                out_ref):                   # (row_tile, 1)         f32  per-row loss
    i_id = pl.program_id(0)                 # row-tile index
    p_id = pl.program_id(1)                 # predictor index
    row_tile = q_ref.shape[0]
    num_cand = cand_ref.shape[0]            # K = 1 + max_neg

    # Folded projection on the MXU:  t = (q@Wq + bq) @ Wp^T * scale  ==  q @ W_comb + b_comb
    t = jnp.dot(q_ref[...], wc_ref[...],
                preferred_element_type=jnp.float32) + bc_ref[...]       # (tm, dim2) f32

    # Score only the K gathered candidates (VPU multiply + lane reduce; no full panel,
    # no gather in-kernel, no count matrix).  Candidate j's layout matches t exactly.
    cols = []
    for j in range(num_cand):                                           # K static unroll (small)
        cj = cand_ref[j].astype(jnp.float32)                            # (tm, dim2)
        cols.append(jnp.sum(t * cj, axis=-1, keepdims=True))            # (tm, 1)
    # NOTE: q_proj·bp*scale is a per-row constant added to every logit; it cancels
    # exactly in (logsumexp - positive_logit), so it is intentionally omitted.

    pos = cols[0]
    m = cols[0]
    for j in range(1, num_cand):
        m = jnp.maximum(m, cols[j])
    s = jnp.zeros_like(m)
    for j in range(num_cand):                                           # K exps per row total
        s = s + jnp.exp(cols[j] - m)
    lse = m + jnp.log(s)

    # Mask padded rows (valid count read from SMEM — no HBM mask stream).
    off = i_id * row_tile
    row = jax.lax.broadcasted_iota(jnp.int32, (row_tile, 1), 0) + off
    valid = (row < nvalid_ref[p_id]).astype(jnp.float32)
    out_ref[...] = (lse - pos) * valid


def cpc_pallas(n_valid, q_rows, cand, w_comb, b_comb, *, row_tile):
    P, N_pad, dim1 = q_rows.shape
    K = cand.shape[1]
    dim2 = cand.shape[-1]
    assert N_pad % row_tile == 0
    num_tiles = N_pad // row_tile

    grid_spec = pltpu.PrefetchScalarGridSpec(
        num_scalar_prefetch=1,
        grid=(num_tiles, P),                # big row axis first -> megacore shards it
        in_specs=[
            pl.BlockSpec((None, row_tile, dim1), lambda i, p, nv: (p, i, 0)),        # q tile
            pl.BlockSpec((None, K, row_tile, dim2), lambda i, p, nv: (p, 0, i, 0)),  # candidates
            pl.BlockSpec((None, dim1, dim2), lambda i, p, nv: (p, 0, 0)),            # W_comb
            pl.BlockSpec((None, 1, dim2), lambda i, p, nv: (p, 0, 0)),               # b_comb
        ],
        out_specs=pl.BlockSpec((None, row_tile, 1), lambda i, p, nv: (p, i, 0)),
    )
    row_losses = pl.pallas_call(
        _cpc_kernel,
        out_shape=jax.ShapeDtypeStruct((P, N_pad, 1), jnp.float32),
        grid_spec=grid_spec,
        compiler_params=pltpu.CompilerParams(
            dimension_semantics=("parallel", "arbitrary"),
            vmem_limit_bytes=_vmem_limit_bytes()),
    )(n_valid, q_rows, cand, w_comb, b_comb)
    return jnp.sum(row_losses)


# ------------------------------ CPC forward -------------------------------- #

def cpc_forward(q_val, p_val, lengths, params, *, num_predictors, max_neg,
                middle_dim, neg_keys):
    B, T, dim1 = q_val.shape
    dim2 = p_val.shape[-1]
    scale = 1.0 / float(np.sqrt(middle_dim))
    q_flat = q_val.reshape(B * T, dim1)
    p_flat = p_val.reshape(B * T, dim2)

    # Host-side valid-row selection (pop / pop_left + mask flatten); needs
    # concrete lengths at trace time.
    rows_list, n_list, active = [], [], []
    for k in range(num_predictors):
        rows = np.concatenate(
            [b * T + np.arange(max(int(lengths[b]) - k, 0), dtype=np.int32)
             for b in range(B)]
        ).astype(np.int32)
        n = int(rows.shape[0])
        if n == 0:
            # Guard: no valid frames for this predictor offset (randint(0, 0) is invalid).
            continue
        rows_list.append(rows)
        n_list.append(n)
        active.append(k)
    if not active:
        return jnp.float32(0.0), []

    n_max = max(n_list)
    row_tile = min(ROW_TILE_MAX, _round_up(n_max, 8))
    N_pad = _round_up(n_max, row_tile)
    K = 1 + max_neg

    qs, cands, wcs, bcs, aux = [], [], [], [], []
    for idx, k in enumerate(active):
        rows, n = rows_list[idx], n_list[idx]
        pad = N_pad - n

        q_k = jnp.pad(jnp.take(q_flat, jnp.asarray(rows), axis=0), ((0, pad), (0, 0)))

        # torch.randint(low=0, high=n, size=(n, max_neg)) equivalent (first n rows used).
        neg_k = jax.random.randint(neg_keys[k], (N_pad, max_neg), 0, n).astype(jnp.int32)

        # Candidate gather (host/XLA-side): column 0 = positive (self), 1.. = negatives.
        local = jnp.concatenate(
            [jnp.arange(N_pad, dtype=jnp.int32)[:, None], neg_k], axis=1)     # (N_pad, K)
        local = jnp.minimum(local, n - 1)            # clamp padded rows; valid rows unchanged
        p_rows_global = jnp.pad(jnp.asarray(rows + k, dtype=jnp.int32), (0, pad))
        global_idx = jnp.take(p_rows_global, local, axis=0)                    # (N_pad, K)
        cand_k = jnp.take(p_flat, global_idx.T, axis=0)                        # (K, N_pad, dim2)

        qs.append(q_k)
        cands.append(cand_k)
        aux.append((rows, np.asarray(neg_k)[:n], n, k))

        # Fold p-projection + 1/sqrt(D) scale into one combined weight (f32 on host).
        wq, bq, wp, bp = params[k]
        wcs.append((wq @ wp.T) * scale)              # (dim1, dim2)
        bcs.append((bq @ wp.T) * scale)              # (1, dim2)
        # (q_proj·bp*scale is a per-row constant over all candidates -> cancels in the loss.)

    q_rows = jnp.stack(qs).astype(COMPUTE_DTYPE)                # (P', N_pad, dim1)
    cand = jnp.stack(cands).astype(COMPUTE_DTYPE)               # (P', K, N_pad, dim2)
    w_comb = jnp.stack(wcs).astype(COMPUTE_DTYPE)               # (P', dim1, dim2)
    b_comb = jnp.stack(bcs).astype(jnp.float32)                 # (P', 1, dim2)
    n_valid = jnp.asarray(n_list, jnp.int32)                    # (P',)

    total = cpc_pallas(n_valid, q_rows, cand, w_comb, b_comb, row_tile=row_tile)
    return total, aux


# ---------------------------------- main ----------------------------------- #

if __name__ == "__main__":
    B, T = 2, 16
    dim1 = dim2 = 32
    middle_dim = 32
    num_predictors = 2
    max_neg = 7                     # hp.num_negatives  (K = 1 + 7 = 8 candidates)
    lengths = np.array([14, 16], np.int32)

    key = jax.random.PRNGKey(0)
    kq, kp, kparam, kneg = jax.random.split(key, 4)
    q_val = jax.random.normal(kq, (B, T, dim1), jnp.float32)
    p_val = jax.random.normal(kp, (B, T, dim2), jnp.float32)

    # deterministic parameter init (PyTorch Linear-style uniform fan-in scaling)
    params = []
    for k in range(num_predictors):
        k0, k1, k2, k3 = jax.random.split(jax.random.fold_in(kparam, k), 4)
        s1, s2 = 1.0 / np.sqrt(dim1), 1.0 / np.sqrt(dim2)
        wq = jax.random.uniform(k0, (dim1, middle_dim), jnp.float32, -s1, s1)
        bq = jax.random.uniform(k1, (1, middle_dim), jnp.float32, -s1, s1)
        wp = jax.random.uniform(k2, (dim2, middle_dim), jnp.float32, -s2, s2)
        bp = jax.random.uniform(k3, (1, middle_dim), jnp.float32, -s2, s2)
        params.append((wq, bq, wp, bp))

    neg_keys = [jax.random.fold_in(kneg, k) for k in range(num_predictors)]

    total, aux = cpc_forward(q_val, p_val, lengths, params,
                             num_predictors=num_predictors, max_neg=max_neg,
                             middle_dim=middle_dim, neg_keys=neg_keys)
    total = jax.block_until_ready(total)

    # ---- numpy reference (float64) using the same sampled negative indices ----
    qf = np.asarray(q_val).reshape(B * T, dim1).astype(np.float64)
    pf = np.asarray(p_val).reshape(B * T, dim2).astype(np.float64)
    ref = 0.0
    for rows, neg_idx_k, n, k in aux:
        wq_, bq_, wp_, bp_ = [np.asarray(x, np.float64) for x in params[k]]
        qp = qf[rows] @ wq_ + bq_
        pp = pf[rows + k] @ wp_ + bp_
        cand_ref = np.concatenate([pp[:, None], pp[neg_idx_k]], axis=1)
        logits = np.einsum("nd,nkd->nk", qp, cand_ref) / np.sqrt(middle_dim)
        m = logits.max(-1, keepdims=True)
        lse = (m + np.log(np.exp(logits - m).sum(-1, keepdims=True)))[:, 0]
        ref += float(np.sum(lse - logits[:, 0]))

    # tolerance accounts for bf16 operands (all accumulation / softmax math is f32)
    np.testing.assert_allclose(float(total), ref, rtol=1e-2, atol=0.5)
    print("KERNEL_OK")
</pallas_src>

<mosaic_0001>
module attributes {stable_mosaic.version = 11 : i64} {
  func.func @_cpc_kernel(%arg0: i32, %arg1: i32, %arg2: memref<2xi32, #tpu.memory_space<smem>>, %arg3: memref<1x32x32xbf16, #tpu.memory_space<vmem>>, %arg4: memref<1x8x32x32xbf16, #tpu.memory_space<vmem>>, %arg5: memref<1x32x32xbf16, #tpu.memory_space<vmem>>, %arg6: memref<1x1x32xf32, #tpu.memory_space<vmem>>, %arg7: memref<1x32x1xf32, #tpu.memory_space<vmem>>) attributes {dimension_semantics = [#tpu.dimension_semantics<parallel>, #tpu.dimension_semantics<arbitrary>], iteration_bounds = array<i64: 1, 2>, scalar_prefetch = 1 : i64, scratch_operands = 0 : i64, tpu.core_type = #tpu.core_type<tc>, window_params = [{transform_indices = @transform_0, window_bounds = array<i64: 1, 32, 32>}, {transform_indices = @transform_1, window_bounds = array<i64: 1, 8, 32, 32>}, {transform_indices = @transform_2, window_bounds = array<i64: 1, 32, 32>}, {transform_indices = @transform_3, window_bounds = array<i64: 1, 1, 32>}, {transform_indices = @transform_4, window_bounds = array<i64: 1, 32, 1>}]} {
    %c0 = arith.constant 0 : index
    %c0_0 = arith.constant 0 : index
    %c0_1 = arith.constant 0 : index
    %0 = vector.load %arg3[%c0, %c0_0, %c0_1] : memref<1x32x32xbf16, #tpu.memory_space<vmem>>, vector<1x32x32xbf16>
    %1 = vector.shape_cast %0 : vector<1x32x32xbf16> to vector<32x32xbf16>
    %c0_2 = arith.constant 0 : index
    %c0_3 = arith.constant 0 : index
    %c0_4 = arith.constant 0 : index
    %2 = vector.load %arg5[%c0_2, %c0_3, %c0_4] : memref<1x32x32xbf16, #tpu.memory_space<vmem>>, vector<1x32x32xbf16>
    %3 = vector.shape_cast %2 : vector<1x32x32xbf16> to vector<32x32xbf16>
    %cst = arith.constant dense<0.000000e+00> : vector<32x32xf32>
    %4 = tpu.matmul %1, %3, %cst {dimension_numbers = #tpu.dot_dimension_numbers<[1], [0], [0], [1], [0, 0, 1, 1], [], []>} : vector<32x32xbf16>, vector<32x32xbf16>, vector<32x32xf32> -> vector<32x32xf32>
    %c0_5 = arith.constant 0 : index
    %c0_6 = arith.constant 0 : index
    %c0_7 = arith.constant 0 : index
    %5 = vector.load %arg6[%c0_5, %c0_6, %c0_7] : memref<1x1x32xf32, #tpu.memory_space<vmem>>, vector<1x1x32xf32>
    %6 = vector.shape_cast %5 : vector<1x1x32xf32> to vector<1x32xf32>
    %7 = vector.broadcast %6 : vector<1x32xf32> to vector<32x32xf32>
    %8 = arith.addf %4, %7 : vector<32x32xf32>
    %c0_8 = arith.constant 0 : index
    %c0_9 = arith.constant 0 : index
    %c0_10 = arith.constant 0 : index
    %c0_11 = arith.constant 0 : index
    %9 = vector.load %arg4[%c0_8, %c0_9, %c0_10, %c0_11] : memref<1x8x32x32xbf16, #tpu.memory_space<vmem>>, vector<1x1x32x32xbf16>
    %10 = vector.shape_cast %9 : vector<1x1x32x32xbf16> to vector<32x32xbf16>
    %11 = arith.extf %10 : vector<32x32xbf16> to vector<32x32xf32>
    %12 = arith.mulf %8, %11 : vector<32x32xf32>
    %cst_12 = arith.constant dense<0.000000e+00> : vector<32xf32>
    %13 = vector.multi_reduction <add>, %12, %cst_12 [1] : vector<32x32xf32> to vector<32xf32>
    %14 = vector.shape_cast %13 : vector<32xf32> to vector<32x1xf32>
    %c0_13 = arith.constant 0 : index
    %c1 = arith.constant 1 : index
    %c0_14 = arith.constant 0 : index
    %c0_15 = arith.constant 0 : index
    %15 = vector.load %arg4[%c0_13, %c1, %c0_14, %c0_15] : memref<1x8x32x32xbf16, #tpu.memory_space<vmem>>, vector<1x1x32x32xbf16>
    %16 = vector.shape_cast %15 : vector<1x1x32x32xbf16> to vector<32x32xbf16>
    %17 = arith.extf %16 : vector<32x32xbf16> to vector<32x32xf32>
    %18 = arith.mulf %8, %17 : vector<32x32xf32>
    %cst_16 = arith.constant dense<0.000000e+00> : vector<32xf32>
    %19 = vector.multi_reduction <add>, %18, %cst_16 [1] : vector<32x32xf32> to vector<32xf32>
    %20 = vector.shape_cast %19 : vector<32xf32> to vector<32x1xf32>
    %c0_17 = arith.constant 0 : index
    %c2 = arith.constant 2 : index
    %c0_18 = arith.constant 0 : index
    %c0_19 = arith.constant 0 : index
    %21 = vector.load %arg4[%c0_17, %c2, %c0_18, %c0_19] : memref<1x8x32x32xbf16, #tpu.memory_space<vmem>>, vector<1x1x32x32xbf16>
    %22 = vector.shape_cast %21 : vector<1x1x32x32xbf16> to vector<32x32xbf16>
    %23 = arith.extf %22 : vector<32x32xbf16> to vector<32x32xf32>
    %24 = arith.mulf %8, %23 : vector<32x32xf32>
    %cst_20 = arith.constant dense<0.000000e+00> : vector<32xf32>
    %25 = vector.multi_reduction <add>, %24, %cst_20 [1] : vector<32x32xf32> to vector<32xf32>
    %26 = vector.shape_cast %25 : vector<32xf32> to vector<32x1xf32>
    %c0_21 = arith.constant 0 : index
    %c3 = arith.constant 3 : index
    %c0_22 = arith.constant 0 : index
    %c0_23 = arith.constant 0 : index
    %27 = vector.load %arg4[%c0_21, %c3, %c0_22, %c0_23] : memref<1x8x32x32xbf16, #tpu.memory_space<vmem>>, vector<1x1x32x32xbf16>
    %28 = vector.shape_cast %27 : vector<1x1x32x32xbf16> to vector<32x32xbf16>
    %29 = arith.extf %28 : vector<32x32xbf16> to vector<32x32xf32>
    %30 = arith.mulf %8, %29 : vector<32x32xf32>
    %cst_24 = arith.constant dense<0.000000e+00> : vector<32xf32>
    %31 = vector.multi_reduction <add>, %30, %cst_24 [1] : vector<32x32xf32> to vector<32xf32>
    %32 = vector.shape_cast %31 : vector<32xf32> to vector<32x1xf32>
    %c0_25 = arith.constant 0 : index
    %c4 = arith.constant 4 : index
    %c0_26 = arith.constant 0 : index
    %c0_27 = arith.constant 0 : index
    %33 = vector.load %arg4[%c0_25, %c4, %c0_26, %c0_27] : memref<1x8x32x32xbf16, #tpu.memory_space<vmem>>, vector<1x1x32x32xbf16>
    %34 = vector.shape_cast %33 : vector<1x1x32x32xbf16> to vector<32x32xbf16>
    %35 = arith.extf %34 : vector<32x32xbf16> to vector<32x32xf32>
    %36 = arith.mulf %8, %35 : vector<32x32xf32>
    %cst_28 = arith.constant dense<0.000000e+00> : vector<32xf32>
    %37 = vector.multi_reduction <add>, %36, %cst_28 [1] : vector<32x32xf32> to vector<32xf32>
    %38 = vector.shape_cast %37 : vector<32xf32> to vector<32x1xf32>
    %c0_29 = arith.constant 0 : index
    %c5 = arith.constant 5 : index
    %c0_30 = arith.constant 0 : index
    %c0_31 = arith.constant 0 : index
    %39 = vector.load %arg4[%c0_29, %c5, %c0_30, %c0_31] : memref<1x8x32x32xbf16, #tpu.memory_space<vmem>>, vector<1x1x32x32xbf16>
    %40 = vector.shape_cast %39 : vector<1x1x32x32xbf16> to vector<32x32xbf16>
    %41 = arith.extf %40 : vector<32x32xbf16> to vector<32x32xf32>
    %42 = arith.mulf %8, %41 : vector<32x32xf32>
    %cst_32 = arith.constant dense<0.000000e+00> : vector<32xf32>
    %43 = vector.multi_reduction <add>, %42, %cst_32 [1] : vector<32x32xf32> to vector<32xf32>
    %44 = vector.shape_cast %43 : vector<32xf32> to vector<32x1xf32>
    %c0_33 = arith.constant 0 : index
    %c6 = arith.constant 6 : index
    %c0_34 = arith.constant 0 : index
    %c0_35 = arith.constant 0 : index
    %45 = vector.load %arg4[%c0_33, %c6, %c0_34, %c0_35] : memref<1x8x32x32xbf16, #tpu.memory_space<vmem>>, vector<1x1x32x32xbf16>
    %46 = vector.shape_cast %45 : vector<1x1x32x32xbf16> to vector<32x32xbf16>
    %47 = arith.extf %46 : vector<32x32xbf16> to vector<32x32xf32>
    %48 = arith.mulf %8, %47 : vector<32x32xf32>
    %cst_36 = arith.constant dense<0.000000e+00> : vector<32xf32>
    %49 = vector.multi_reduction <add>, %48, %cst_36 [1] : vector<32x32xf32> to vector<32xf32>
    %50 = vector.shape_cast %49 : vector<32xf32> to vector<32x1xf32>
    %c0_37 = arith.constant 0 : index
    %c7 = arith.constant 7 : index
    %c0_38 = arith.constant 0 : index
    %c0_39 = arith.constant 0 : index
    %51 = vector.load %arg4[%c0_37, %c7, %c0_38, %c0_39] : memref<1x8x32x32xbf16, #tpu.memory_space<vmem>>, vector<1x1x32x32xbf16>
    %52 = vector.shape_cast %51 : vector<1x1x32x32xbf16> to vector<32x32xbf16>
    %53 = arith.extf %52 : vector<32x32xbf16> to vector<32x32xf32>
    %54 = arith.mulf %8, %53 : vector<32x32xf32>
    %cst_40 = arith.constant dense<0.000000e+00> : vector<32xf32>
    %55 = vector.multi_reduction <add>, %54, %cst_40 [1] : vector<32x32xf32> to vector<32xf32>
    %56 = vector.shape_cast %55 : vector<32xf32> to vector<32x1xf32>
    %57 = arith.maximumf %14, %20 : vector<32x1xf32>
    %58 = arith.maximumf %57, %26 : vector<32x1xf32>
    %59 = arith.maximumf %58, %32 : vector<32x1xf32>
    %60 = arith.maximumf %59, %38 : vector<32x1xf32>
    %61 = arith.maximumf %60, %44 : vector<32x1xf32>
    %62 = arith.maximumf %61, %50 : vector<32x1xf32>
    %63 = arith.maximumf %62, %56 : vector<32x1xf32>
    %cst_41 = arith.constant 0.000000e+00 : f32
    %64 = vector.broadcast %cst_41 : f32 to vector<32x1xf32>
    %65 = arith.subf %14, %63 : vector<32x1xf32>
    %66 = math.exp %65 : vector<32x1xf32>
    %67 = arith.addf %64, %66 : vector<32x1xf32>
    %68 = arith.subf %20, %63 : vector<32x1xf32>
    %69 = math.exp %68 : vector<32x1xf32>
    %70 = arith.addf %67, %69 : vector<32x1xf32>
    %71 = arith.subf %26, %63 : vector<32x1xf32>
    %72 = math.exp %71 : vector<32x1xf32>
    %73 = arith.addf %70, %72 : vector<32x1xf32>
    %74 = arith.subf %32, %63 : vector<32x1xf32>
    %75 = math.exp %74 : vector<32x1xf32>
    %76 = arith.addf %73, %75 : vector<32x1xf32>
    %77 = arith.subf %38, %63 : vector<32x1xf32>
    %78 = math.exp %77 : vector<32x1xf32>
    %79 = arith.addf %76, %78 : vector<32x1xf32>
    %80 = arith.subf %44, %63 : vector<32x1xf32>
    %81 = math.exp %80 : vector<32x1xf32>
    %82 = arith.addf %79, %81 : vector<32x1xf32>
    %83 = arith.subf %50, %63 : vector<32x1xf32>
    %84 = math.exp %83 : vector<32x1xf32>
    %85 = arith.addf %82, %84 : vector<32x1xf32>
    %86 = arith.subf %56, %63 : vector<32x1xf32>
    %87 = math.exp %86 : vector<32x1xf32>
    %88 = arith.addf %85, %87 : vector<32x1xf32>
    %89 = math.log %88 : vector<32x1xf32>
    %90 = arith.addf %63, %89 : vector<32x1xf32>
    %c32_i32 = arith.constant 32 : i32
    %91 = arith.muli %arg0, %c32_i32 : i32
    %92 = tpu.iota {dimensions = array<i32: 0>} : vector<32x1xi32>
    %93 = vector.broadcast %91 : i32 to vector<32x1xi32>
    %94 = arith.addi %92, %93 : vector<32x1xi32>
    %95 = arith.index_cast %arg1 : i32 to index
    %96 = memref.load %arg2[%95] : memref<2xi32, #tpu.memory_space<smem>>
    %97 = vector.broadcast %96 : i32 to vector<32x1xi32>
    %98 = arith.cmpi slt, %94, %97 : vector<32x1xi32>
    %99 = arith.extui %98 : vector<32x1xi1> to vector<32x1xi32>
    %100 = arith.sitofp %99 : vector<32x1xi32> to vector<32x1xf32>
    %101 = arith.subf %90, %14 : vector<32x1xf32>
    %102 = arith.mulf %101, %100 : vector<32x1xf32>
    %c0_42 = arith.constant 0 : index
    %c0_43 = arith.constant 0 : index
    %c0_44 = arith.constant 0 : index
    %103 = vector.load %arg7[%c0_42, %c0_43, %c0_44] : memref<1x32x1xf32, #tpu.memory_space<vmem>>, vector<1x32x1xf32>
    %104 = vector.shape_cast %103 : vector<1x32x1xf32> to vector<32x1xf32>
    %105 = vector.shape_cast %102 : vector<32x1xf32> to vector<1x32x1xf32>
    tpu.vector_store %arg7[%c0_42, %c0_43, %c0_44], %105 {strides = array<i32>} : memref<1x32x1xf32, #tpu.memory_space<vmem>>, vector<1x32x1xf32>,
    return
  }
  func.func @transform_0(%arg0: i32, %arg1: i32, %arg2: memref<2xi32, #tpu.memory_space<smem>>) -> (i32, i32, i32) {
    %c0_i32 = arith.constant 0 : i32
    %c0_i32_0 = arith.constant 0 : i32
    return %arg1, %arg0, %c0_i32 : i32, i32, i32
  }
  func.func @transform_1(%arg0: i32, %arg1: i32, %arg2: memref<2xi32, #tpu.memory_space<smem>>) -> (i32, i32, i32, i32) {
    %c0_i32 = arith.constant 0 : i32
    %c0_i32_0 = arith.constant 0 : i32
    %c0_i32_1 = arith.constant 0 : i32
    return %arg1, %c0_i32, %arg0, %c0_i32_0 : i32, i32, i32, i32
  }
  func.func @transform_2(%arg0: i32, %arg1: i32, %arg2: memref<2xi32, #tpu.memory_space<smem>>) -> (i32, i32, i32) {
    %c0_i32 = arith.constant 0 : i32
    %c0_i32_0 = arith.constant 0 : i32
    %c0_i32_1 = arith.constant 0 : i32
    return %arg1, %c0_i32, %c0_i32_0 : i32, i32, i32
  }
  func.func @transform_3(%arg0: i32, %arg1: i32, %arg2: memref<2xi32, #tpu.memory_space<smem>>) -> (i32, i32, i32) {
    %c0_i32 = arith.constant 0 : i32
    %c0_i32_0 = arith.constant 0 : i32
    %c0_i32_1 = arith.constant 0 : i32
    return %arg1, %c0_i32, %c0_i32_0 : i32, i32, i32
  }
  func.func @transform_4(%arg0: i32, %arg1: i32, %arg2: memref<2xi32, #tpu.memory_space<smem>>) -> (i32, i32, i32) {
    %c0_i32 = arith.constant 0 : i32
    %c0_i32_0 = arith.constant 0 : i32
    return %arg1, %arg0, %c0_i32 : i32, i32, i32
  }
}

</mosaic_0001>

<bundles_post_ra>
// kernel: tpu_custom_call.1
= control target key start
LH: loop header
LB: loop body
LE: loop exit
PB: predicated region body
PF: predicated region fallthrough
CT: control target
= control target key end

     0   :  { %s1435_s21 = smov [#allocation3]   ;;  %s1905_s0 = inlined_call_operand.hbm [shape: s32[2], index: 0, kind: input, shape index: {}]   ;;  %s1906_s1 = inlined_call_operand.hbm [shape: bf16[2,32,32], index: 1, kind: input, shape index: {}]   ;;  %s1907_s2 = inlined_call_operand.hbm [shape: bf16[2,8,32,32], index: 2, kind: input, shape index: {}]   ;;  %s1908_s3 = inlined_call_operand.hbm [shape: bf16[2,32,32], index: 3, kind: input, shape index: {}]   ;;  %s1909_s4 = inlined_call_operand.vmem [shape: f32[2,1,32], index: 4, kind: input, shape index: {}]   ;;  %s1910_s5 = inlined_call_operand.vmem [shape: f32[2,32,1], index: 5, kind: output, shape index: {}]  }
   0x1   :  { %1913 = sst [smem:[#allocation14_spill]] %s1907_s2  ;;  %s11_s20 = sshll.u32 %s1905_s0, 4  ;;  %s12_s20 = int_to_ptr.hbm [resolvable:$true] %s11_s20 }
   0x2   :  { %14 = dma.hbm_to_smem %s12_s20, 16, %s1435_s21, [#allocation2] }
   0x3   :  { %1401 = dma.done.wait [#allocation2], 16 }
   0x4   :  { %1402 = vsyncadd [#allocation2], 4294967280 }
   0x5   :  { %17 = sfence }
   0x6   :  { %18 = vsyncpa [#allocation5], 0 }
   0x7   :  { %20 = vsyncpa [#allocation5 + $0x1], 0 }
   0x8   :  { %21 = vsyncpa [#allocation7], 0 }
   0x9   :  { %23 = vsyncpa [#allocation7 + $0x1], 0  ;;  %s1472_s22 = smov 0   ;;  %s1474_s23 = smov 0  }
   0xa   :  { %s1476_s24 = smov 0   ;;  %s1478_s25 = smov 0  }
   0xb   :  { %s1480_s26 = smov 0   ;;  %s1482_s0 = smov 0  }
   0xc LB: > { %s1911_s27 = sadd.s32 4294967295, %s1433_s0   ;;  %s38_s28 = sadd.s32 1, %s1429_s26  ;;  %s1433_s0 = sphi %s1482_s0, %s29_s0   ;;  %s1429_s26 = sphi %s1480_s26, %s1927_s26   ;;  %s1425_s25 = sphi %s1478_s25, %s1926_s25   ;;  %s1421_s24 = sphi %s1476_s24, %s1925_s24   ;;  %s1417_s23 = sphi %s1474_s23, %s1924_s23   ;;  %s1413_s22 = sphi %s1472_s22, %s1923_s22  }
   0xd   : > { %p39_p0 = scmp.ge.s32.totalorder %s38_s28, 2  ;;  %s50_s29 = sadd.s32 1, %s1421_s24 }
   0xe   : > { %p57_p1 = scmp.ne.s32.totalorder %s1421_s24, %s1417_s23  ;;  %p58_p2 = scmp.eq.s32.totalorder %s1433_s0, 0 }
   0xf   : > { %s1929_s28 = smov (%p39_p0, %s38_s28), 0  ;;  %p63_p4 = scmp.ne.s32.totalorder %s1417_s23, %s1413_s22 }
  0x10   : > { %1914 = sst [smem:[#allocation12_spill]] %s1929_s28  ;;  %p59_p3 = por %p58_p2, %p57_p1 }
  0x11   : > { %s45_s30 = ssub.s32 %s1429_s26, %s1929_s28  ;;  %p64_p5 = scmp.eq.s32.totalorder %s1911_s27, 0 }
  0x12   : > { %p48_p6 = scmp.eq.s32.totalorder %s45_s30, 0  ;;  %p1149_p8 = scmp.lt.s32.totalorder %s1433_s0, 2 }
  0x13   : > { %p1513_p7 = por %p64_p5, %p63_p4  ;;  %s1522_s8 = sand.u32 1, %s1421_s24  }
  0x14   : > { %s1519_s7 = scalar_select %p48_p6, %s1421_s24, %s50_s29  }
  0x15   : > { %p1524_p9 = pnand %p1149_p8, %p59_p3  ;;  %s219_s10 = sand.u32 1, %s1433_s0  }
  0x16   : > { %1916 = sst [smem:[#allocation13_spill]] %s1519_s7  ;;  %s980_s11 = sshll.u32 %s1522_s8, 7 }
  0x17   : > { %s1045_s12 = sshll.u32 %s1429_s26, 7  ;;  %s1918_s2 = sld [smem:[#allocation14_spill]] }
  0x18   : > { %s223_s16 = scalar_lea.vmem [#allocation6], %s980_s11  ;;  %p986_p10 = scmp.ge.s32.totalorder %s1433_s0, 1 }
  0x19   : > { %s233_s17 = sshll.u32 %s223_s16, 4  ;;  %s220_s19 = scalar_lea.sflag [#allocation7], %s219_s10  ;;  %s234_s17 = int_to_ptr.vmem [resolvable:$true] %s233_s17 }
  0x1a   : > { %s1436_s20 = smov 64   ;;  %s1437_s21 = smov 4  }
  0x1b   : > { %p269_p11 = scmp.lt.s32.totalorder %s1433_s0, 3  ;;  %s977_s29 = sshll.u32 %s1522_s8, 4 }
  0x1c   : > { %s1044_s30 = sshll.u32 %s1429_s26, 4  ;;  %s199_s14 = scalar_lea.vmem [#allocation4], %s977_s29 }
  0x1d   : > { %s230_s15 = scalar_lea.hbm %s1918_s2, %s1045_s12  ;;  %p1538_p12 = pnand %p986_p10, %p269_p11 }
  0x1e   : > { %s231_s18 = sshll.u32 %s230_s15, 4  ;;  %s206_s13 = scalar_lea.hbm %s1906_s1, %s1044_s30  ;;  %s232_s18 = int_to_ptr.hbm [resolvable:$true] %s231_s18 }
  0x1f   : > { %1145 = dma.hbm_to_vmem [thread:$0]  (!%p1524_p9), %s232_s18, 2048, %s234_s17, %s220_s19, %s1436_s20, %s1436_s20, %s1437_s21  }
  0x20   : > { %s209_s15 = sshll.u32 %s199_s14, 4  ;;  %s207_s16 = sshll.u32 %s206_s13, 4  ;;  %s210_s15 = int_to_ptr.vmem [resolvable:$true] %s209_s15  ;;  %s208_s16 = int_to_ptr.hbm [resolvable:$true] %s207_s16 }
  0x21   : > { %s196_s10 = scalar_lea.sflag [#allocation5], %s1522_s8  ;;  %s252_s27 = scalar_lea.hbm %s1908_s3, %s1044_s30 }
  0x22   : > { %1142 = dma.hbm_to_vmem [thread:$0]  (!%p1524_p9), %s208_s16, 256, %s210_s15, %s196_s10, %s1436_s20, %s1436_s20, %s1437_s21  }
  0x23   : > { %s247_s2 = scalar_lea.vmem [#allocation8], %s977_s29  ;;  %s253_s7 = sshll.u32 %s252_s27, 4  ;;  %s254_s7 = int_to_ptr.hbm [resolvable:$true] %s253_s7 }
  0x24   : > { %s255_s28 = sshll.u32 %s247_s2, 4  ;;  %273 = sbr.rel (%p1538_p12) target bundleno = 436 (0x1b4), region = 36  ;;  %s256_s28 = int_to_ptr.vmem [resolvable:$true] %s255_s28 }
  0x25   : > { %1148 = dma.hbm_to_vmem [thread:$0]  (!%p1524_p9), %s254_s7, 256, %s256_s28, %s220_s19, %s1436_s20, %s1436_s20, %s1437_s21  }
  0x26   : > { %s275_s11 = sand.u32 (!%p1538_p12), 1, %s1417_s23  }
  0x27   : > { %s987_s8 = sshll.u32 (!%p1538_p12), %s275_s11, 4  ;;  %s276_s12 = scalar_lea.sflag (!%p1538_p12), [#allocation5], %s275_s11 }
  0x28   : > { %s279_s13 = scalar_lea.vmem (!%p1538_p12), [#allocation4], %s987_s8 }
  0x29   : > { %1404 = dma.done.wait (%p1513_p7), %s276_s12, 256  }
  0x2a   : > { %1406 = vsyncadd (%p1513_p7), %s276_s12, 4294967040  ;;  %s1920_s2 = sadd.s32 4294967295, %s1433_s0   ;;  %s988_s9 = sshll.u32 %s275_s11, 7 }
  0x2b   : > { %s285_s27 = sand.u32 1, %s1920_s2   ;;  %s1564_s7 = scalar_lea.vmem [#allocation6], %s988_s9 }
  0x2c   : > { %s286_s28 = scalar_lea.sflag [#allocation7], %s285_s27 }
  0x2d   : > { %1408 = dma.done.wait (%p1513_p7), %s286_s28, 2304  }
  0x2e   : > { %1410 = vsyncadd (%p1513_p7), %s286_s28, 4294964992  ;;  %p344_p13 = scmp.lt.s32.totalorder %s1425_s25, 1  ;;  %s299_s20 = scalar_lea.vmem [#allocation8], %s987_s8  ;;  %v1048_v2 = vld [vmem:[%s279_s13] sm:$0xff]  ;;  %v1049_v3 = vld [vmem:[%s279_s13 + $0x8] sm:$0xff]  ;;  %vm392_vm0 = vcmask 261120  }
  0x2f   : > { %v1051_v0 = vld [vmem:[%s299_s20 + $0x8] sm:$0xff]  ;;  %v1050_v1 = vld [vmem:[%s299_s20] sm:$0xff]  ;;  %s796_s6 = sld [smem:[#allocation3 + %s1425_s25]]  ;;  %vm818_vm2 = vcmask 7168  }
  0x30   : > { %s1572_s19 = scalar_select %p344_p13, %s1425_s25, 1  ;;  %405 = vmatpush.bf16.msra.mxu0 %v1051_v0  ;;  %1131 = vmatpush.bf16.msra.mxu1 %v1051_v0  ;;  %v1581_v4 = vld [vmem:[%s1564_s7 + $0x8] sm:$0xff]   ;;  %v1584_v5 = vld [vmem:[%s1564_s7 + $0x10] sm:$0xff]   ;;  %v1587_v6 = vld [vmem:[%s1564_s7] sm:$0xff]  }
  0x31   : > { %v1058_v8 = vunpack.c.l.bf16 %v1581_v4  ;;  %v1062_v9 = vunpack.c.l.bf16 %v1584_v5  ;;  %v1054_v10 = vunpack.c.l.bf16 %v1587_v6  ;;  %v1601_v15 = vld [vmem:[%s1564_s7 + $0x28] sm:$0xff]   ;;  %v1604_v16 = vld [vmem:[%s1564_s7 + $0x20] sm:$0xff]   ;;  %v1610_v20 = vld [vmem:[%s1564_s7 + $0x18] sm:$0xff]  }
  0x32   : > { %s346_s29 = scalar_lea.vmem %s1909_s4, %s1572_s19  ;;  %v1074_v21 = vunpack.c.l.bf16 %v1601_v15  ;;  %v1070_v25 = vunpack.c.l.bf16 %v1604_v16  ;;  %v1066_v26 = vunpack.c.l.bf16 %v1610_v20  ;;  %v1622_v30 = vld [vmem:[%s1564_s7 + $0x40] sm:$0xff]   ;;  %v1625_v31 = vld [vmem:[%s1564_s7 + $0x38] sm:$0xff]   ;;  %v1628_v32 = vld [vmem:[%s1564_s7 + $0x30] sm:$0xff]   ;;  %s1047_s25 = sshll.u32 %s1572_s19, 5 }
  0x33   : > { %v1589_v7 = vld [vmem:[%s346_s29] ss:$0 sm:$0xff]  ;;  %v1086_v35 = vunpack.c.l.bf16 %v1622_v30  ;;  %v1082_v36 = vunpack.c.l.bf16 %v1625_v31  ;;  %v1078_v38 = vunpack.c.l.bf16 %v1628_v32  ;;  %v1643_v43 = vld [vmem:[%s1564_s7 + $0x50] sm:$0xff]   ;;  %v1646_v44 = vld [vmem:[%s1564_s7 + $0x48] sm:$0xff]   ;;  %s1803_s15 = scalar_lea.vmem %s1910_s5, %s1047_s25 }
  0x34   : > { %406 = vmatpush.bf16.msra.mxu0 %v1050_v1  ;;  %1132 = vmatpush.bf16.msra.mxu1 %v1050_v1  ;;  %v1640_v42 = vld [vmem:[%s1564_s7 + $0x58] sm:$0xff]   ;;  %v1094_v48 = vunpack.c.l.bf16 %v1643_v43  ;;  %v1090_v50 = vunpack.c.l.bf16 %v1646_v44  ;;  %v1658_v54 = vld [vmem:[%s1564_s7 + $0x70] sm:$0xff]   ;;  %v1661_v55 = vld [vmem:[%s1564_s7 + $0x68] sm:$0xff]  }
  0x35   : > { %v1098_v47 = vunpack.c.l.bf16 %v1640_v42  ;;  %v1664_v56 = vld [vmem:[%s1564_s7 + $0x60] sm:$0xff]   ;;  %v1110_v59 = vunpack.c.l.bf16 %v1658_v54  ;;  %v1106_v60 = vunpack.c.l.bf16 %v1661_v55 }
  0x36   : > { %v1102_v62 = vunpack.c.l.bf16 %v1664_v56 }
  0x37   : > { %1008 = vmatmul.msk.bf16.vlgmr.msra.gmra.mxu0 %vm392_vm0, %v1048_v2  ;;  %1009 = vmatmul.msk.bf16.vlgmr.msra.gmra.mxu1 %vm392_vm0, %v1049_v3 }
  0xb4   : > { %v408_v11 = vpop.f32.mrf.mxu0  ;;  %v413_v12 = vpop.f32.mrf.mxu1 }
  0xb5   : > { %v1595_v13 = vadd.f32 %v1589_v7, %v408_v11  ;;  %v1598_v14 = vadd.f32 %v1589_v7, %v413_v12 }
  0xb7   : > { %v428_v17 = vmul.f32 %v1058_v8, %v1598_v14  ;;  %v451_v18 = vmul.f32 %v1062_v9, %v1595_v13  ;;  %v426_v19 = vmul.f32 %v1054_v10, %v1595_v13  ;;  %v478_v27 = vmul.f32 %v1074_v21, %v1598_v14 }
  0xb8   : > { %v476_v28 = vmul.f32 %v1070_v25, %v1595_v13  ;;  %v453_v29 = vmul.f32 %v1066_v26, %v1598_v14  ;;  %v526_v39 = vmul.f32 %v1086_v35, %v1595_v13  ;;  %v503_v40 = vmul.f32 %v1082_v36, %v1598_v14 }
  0xb9   : > { %v436_v22 = vsel %vm392_vm0, %v428_v17, 0.0  ;;  %v455_v23 = vsel %vm392_vm0, %v451_v18, 0.0  ;;  %v430_v24 = vsel %vm392_vm0, %v426_v19, 0.0  ;;  %v486_v33 = vsel %vm392_vm0, %v478_v27, 0.0 }
  0xba   : > { %437 = vadd.xlane.f32.xlu1 %v436_v22  ;;  %456 = vadd.xlane.f32.xlu2 %v455_v23  ;;  %v480_v34 = vsel %vm392_vm0, %v476_v28, 0.0  ;;  %v461_v37 = vsel %vm392_vm0, %v453_v29, 0.0  ;;  %v501_v41 = vmul.f32 %v1078_v38, %v1595_v13  ;;  %v530_v45 = vsel %vm392_vm0, %v526_v39, 0.0 }
  0xbb   : > { %431 = vadd.xlane.f32.xlu0 %v430_v24  ;;  %v511_v46 = vsel %vm392_vm0, %v503_v40, 0.0  ;;  %v553_v51 = vmul.f32 %v1098_v47, %v1598_v14  ;;  %v551_v52 = vmul.f32 %v1094_v48, %v1595_v13  ;;  %v528_v53 = vmul.f32 %v1090_v50, %v1598_v14 }
  0xbc   : > { %v505_v49 = vsel %vm392_vm0, %v501_v41, 0.0  ;;  %v601_v63 = vmul.f32 %v1110_v59, %v1595_v13  ;;  %v578_v0 = vmul.f32 %v1106_v60, %v1598_v14  ;;  %v410_v1 = vpop.f32.mrf.mxu0  ;;  %v415_v2 = vpop.f32.mrf.mxu1  ;;  %v576_v3 = vmul.f32 %v1102_v62, %v1595_v13 }
  0xbd   : > { %v561_v57 = vsel %vm392_vm0, %v553_v51, 0.0  ;;  %v555_v58 = vsel %vm392_vm0, %v551_v52, 0.0  ;;  %v536_v61 = vsel %vm392_vm0, %v528_v53, 0.0  ;;  %v1059_v8 = vunpack.c.h.bf16 %v1581_v4  ;;  %v1130_v52 = vld [vmem:[%s1564_s7 + $0x78] sm:$0xff]  }
  0xbe   : > { %v1063_v9 = vunpack.c.h.bf16 %v1584_v5  ;;  %v411_v10 = vadd.f32 %v1589_v7, %v410_v1  ;;  %v1679_v11 = vadd.f32 %v1589_v7, %v415_v2  ;;  %v605_v12 = vsel %vm392_vm0, %v601_v63, 0.0 }
  0xbf   : > { %v586_v17 = vsel %vm392_vm0, %v578_v0, 0.0  ;;  %v580_v18 = vsel %vm392_vm0, %v576_v3, 0.0  ;;  %v1055_v19 = vunpack.c.h.bf16 %v1587_v6  ;;  %v1067_v22 = vunpack.c.h.bf16 %v1610_v20 }
  0xc0   : > { %v429_v4 = vmul.f32 %v1059_v8, %v1679_v11  ;;  %v452_v13 = vmul.f32 %v1063_v9, %v411_v10  ;;  %v1075_v23 = vunpack.c.h.bf16 %v1601_v15  ;;  %v1071_v25 = vunpack.c.h.bf16 %v1604_v16 }
  0xc1   : > { %v427_v5 = vmul.f32 %v1055_v19, %v411_v10  ;;  %v454_v6 = vmul.f32 %v1067_v22, %v1679_v11  ;;  %v1079_v20 = vunpack.c.h.bf16 %v1628_v32  ;;  %v1087_v15 = vunpack.c.h.bf16 %v1622_v30 }
  0xc2   : > { %487 = vadd.xlane.f32.xlu1 %v486_v33  ;;  %481 = vadd.xlane.f32.xlu2 %v480_v34  ;;  %v439_v21 = vsel %vm392_vm0, %v429_v4, 0.0  ;;  %v458_v7 = vsel %vm392_vm0, %v452_v13, 0.0  ;;  %v479_v26 = vmul.f32 %v1075_v23, %v1679_v11  ;;  %v477_v27 = vmul.f32 %v1071_v25, %v411_v10 }
  0xc3   : > { %462 = vadd.xlane.f32.xlu0 %v461_v37  ;;  %v433_v24 = vsel %vm392_vm0, %v427_v5, 0.0  ;;  %v464_v28 = vsel %vm392_vm0, %v454_v6, 0.0  ;;  %v1083_v16 = vunpack.c.h.bf16 %v1625_v31  ;;  %v502_v34 = vmul.f32 %v1079_v20, %v411_v10 }
  0xc4   : > { %v489_v29 = vsel %vm392_vm0, %v479_v26, 0.0  ;;  %v483_v33 = vsel %vm392_vm0, %v477_v27, 0.0  ;;  %v527_v35 = vmul.f32 %v1087_v15, %v411_v10  ;;  %v1091_v39 = vunpack.c.h.bf16 %v1646_v44 }
  0xc5   : > { %v504_v36 = vmul.f32 %v1083_v16, %v1679_v11  ;;  %v508_v37 = vsel %vm392_vm0, %v502_v34, 0.0  ;;  %v1099_v32 = vunpack.c.h.bf16 %v1640_v42  ;;  %v1095_v40 = vunpack.c.h.bf16 %v1643_v43 }
  0xc6   : > { %v533_v38 = vsel %vm392_vm0, %v527_v35, 0.0  ;;  %v529_v31 = vmul.f32 %v1091_v39, %v1679_v11  ;;  %v1103_v44 = vunpack.c.h.bf16 %v1664_v56  ;;  %v1111_v42 = vunpack.c.h.bf16 %v1658_v54 }
  0xc7   : > { %v514_v30 = vsel %vm392_vm0, %v504_v36, 0.0  ;;  %v554_v41 = vmul.f32 %v1099_v32, %v1679_v11  ;;  %v1107_v43 = vunpack.c.h.bf16 %v1661_v55  ;;  %v1114_v56 = vunpack.c.l.bf16 %v1130_v52 }
  0xc8   : > { %v602_v50 = vmul.f32 %v1111_v42, %v411_v10 }
  0xc9   : > { %v564_v47 = vsel %vm392_vm0, %v554_v41, 0.0  ;;  %v579_v51 = vmul.f32 %v1107_v43, %v1679_v11  ;;  %v603_v55 = vmul.f32 %v1114_v56, %v1598_v14 }
  0xca   : > { %531 = vadd.xlane.f32.xlu1 %v530_v45  ;;  %512 = vadd.xlane.f32.xlu2 %v511_v46  ;;  %v552_v45 = vmul.f32 %v1095_v40, %v411_v10  ;;  %v539_v46 = vsel %vm392_vm0, %v529_v31, 0.0 }
  0xcb   : > { %506 = vadd.xlane.f32.xlu0 %v505_v49  ;;  %v577_v49 = vmul.f32 %v1103_v44, %v411_v10  ;;  %v589_v54 = vsel %vm392_vm0, %v579_v51, 0.0 }
  0xcc   : > { %v558_v48 = vsel %vm392_vm0, %v552_v45, 0.0 }
  0xcd   : > { %v583_v53 = vsel %vm392_vm0, %v577_v49, 0.0 }
  0xd2   : > { %562 = vadd.xlane.f32.xlu1 %v561_v57  ;;  %556 = vadd.xlane.f32.xlu2 %v555_v58  ;;  %v608_v57 = vsel %vm392_vm0, %v602_v50, 0.0  ;;  %v1115_v58 = vunpack.c.h.bf16 %v1130_v52 }
  0xd3   : > { %537 = vadd.xlane.f32.xlu0 %v536_v61  ;;  %v611_v61 = vsel %vm392_vm0, %v603_v55, 0.0 }
  0xd4   : > { %v604_v59 = vmul.f32 %v1115_v58, %v1679_v11 }
  0xd6   : > { %v614_v60 = vsel %vm392_vm0, %v604_v59, 0.0 }
  0xda   : > { %606 = vadd.xlane.f32.xlu1 %v605_v12  ;;  %587 = vadd.xlane.f32.xlu2 %v586_v17 }
  0xdb   : > { %581 = vadd.xlane.f32.xlu0 %v580_v18 }
  0xe2   : > { %440 = vadd.xlane.f32.xlu1 %v439_v21  ;;  %459 = vadd.xlane.f32.xlu2 %v458_v7 }
  0xe3   : > { %434 = vadd.xlane.f32.xlu0 %v433_v24 }
  0xea   : > { %465 = vadd.xlane.f32.xlu1 %v464_v28  ;;  %490 = vadd.xlane.f32.xlu2 %v489_v29 }
  0xeb   : > { %484 = vadd.xlane.f32.xlu0 %v483_v33 }
  0xf2   : > { %509 = vadd.xlane.f32.xlu1 %v508_v37  ;;  %534 = vadd.xlane.f32.xlu2 %v533_v38 }
  0xf3   : > { %515 = vadd.xlane.f32.xlu0 %v514_v30 }
  0xfa   : > { %540 = vadd.xlane.f32.xlu1 %v539_v46  ;;  %565 = vadd.xlane.f32.xlu2 %v564_v47 }
  0xfb   : > { %559 = vadd.xlane.f32.xlu0 %v558_v48 }
 0x102   : > { %584 = vadd.xlane.f32.xlu1 %v583_v53  ;;  %609 = vadd.xlane.f32.xlu2 %v608_v57 }
 0x103   : > { %590 = vadd.xlane.f32.xlu0 %v589_v54 }
 0x10a   : > { %615 = vadd.xlane.f32.xlu1 %v614_v60 }
 0x10b   : > { %612 = vadd.xlane.f32.xlu0 %v611_v61  ;;  %v786_v61 = vlaneseq }
 0x12d   : > { %v1724_v62 = vpop.xlane.xlu1 %437  ;;  %v457_v63 = vpop.xlane.xlu2 %456 }
 0x12e   : > { %v1726_v0 = vpop.xlane.xlu0 %431 }
 0x12f   : > { %v617_v10 = vmax.f32 %v1726_v0, %v457_v63 }
 0x135   : > { %v1728_v1 = vpop.xlane.xlu1 %487  ;;  %v482_v2 = vpop.xlane.xlu2 %481 }
 0x136   : > { %v1730_v3 = vpop.xlane.xlu0 %462  ;;  %v621_v11 = vmax.f32 %v617_v10, %v482_v2 }
 0x13d   : > { %v532_v8 = vpop.xlane.xlu1 %531  ;;  %v1732_v9 = vpop.xlane.xlu2 %512 }
 0x13e   : > { %v507_v14 = vpop.xlane.xlu0 %506 }
 0x13f   : > { %v625_v19 = vmax.f32 %v621_v11, %v507_v14 }
 0x141   : > { %v629_v4 = vmax.f32 %v625_v19, %v532_v8  ;;  %v619_v19 = vmax.f32 %v1724_v62, %v1730_v3 }
 0x145   : > { %v1735_v12 = vpop.xlane.xlu1 %562  ;;  %v557_v17 = vpop.xlane.xlu2 %556 }
 0x146   : > { %v1737_v18 = vpop.xlane.xlu0 %537  ;;  %v633_v13 = vmax.f32 %v629_v4, %v557_v17  ;;  %v1782_v4 = vstv %s796_s6 }
 0x14d   : > { %v607_v5 = vpop.xlane.xlu1 %606  ;;  %v1739_v21 = vpop.xlane.xlu2 %587 }
 0x14e   : > { %v582_v7 = vpop.xlane.xlu0 %581 }
 0x14f   : > { %v637_v22 = vmax.f32 %v633_v13, %v582_v7 }
 0x151   : > { %v1741_v23 = vmax.f32 %v637_v22, %v607_v5 }
 0x153   : > { %v645_v24 = vsub.f32 %v1726_v0, %v1741_v23  ;;  %v661_v25 = vsub.f32 %v457_v63, %v1741_v23  ;;  %v677_v6 = vsub.f32 %v482_v2, %v1741_v23  ;;  %v693_v26 = vsub.f32 %v507_v14, %v1741_v23 }
 0x154   : > { %v709_v33 = vsub.f32 %v532_v8, %v1741_v23  ;;  %v725_v35 = vsub.f32 %v557_v17, %v1741_v23  ;;  %v741_v37 = vsub.f32 %v582_v7, %v1741_v23  ;;  %v757_v39 = vsub.f32 %v607_v5, %v1741_v23 }
 0x155   : > { %v649_v27 = vmul.f32 1.442695, %v645_v24  ;;  %v665_v28 = vmul.f32 1.442695, %v661_v25  ;;  %v1748_v29 = vpop.xlane.xlu1 %440  ;;  %v1750_v20 = vpop.xlane.xlu2 %459  ;;  %v681_v15 = vmul.f32 1.442695, %v677_v6  ;;  %v623_v25 = vmax.f32 %v619_v19, %v1728_v1 }
 0x156   : > { %v1753_v16 = vpop.xlane.xlu0 %434  ;;  %v697_v34 = vmul.f32 1.442695, %v693_v26  ;;  %v713_v36 = vmul.f32 1.442695, %v709_v33  ;;  %v729_v38 = vmul.f32 1.442695, %v725_v35 }
 0x157   : > { %1203 = vpow2.f32 %v649_v27  ;;  %v745_v41 = vmul.f32 1.442695, %v741_v37  ;;  %v761_v44 = vmul.f32 1.442695, %v757_v39  ;;  %v618_v55 = vmax.f32 %v1753_v16, %v1750_v20 }
 0x158   : > { %1205 = vpow2.f32 %v665_v28  ;;  %v1778_v17 = vshrl.u32 %v786_v61, 7  ;;  %v627_v33 = vmax.f32 %v623_v25, %v1732_v9 }
 0x159   : > { %1207 = vpow2.f32 %v681_v15 }
 0x15a   : > { %1209 = vpow2.f32 %v697_v34  ;;  %vm798_vm1 = vcmp.lt.s32.totalorder %v1778_v17, %v1782_v4  ;;  %v1438_v34 = vmov 0.0  }
 0x15b   : > { %1211 = vpow2.f32 %v713_v36  ;;  %v1038_v35 = vsel %vm798_vm1, 1.0, %v1438_v34 }
 0x15c   : > { %1213 = vpow2.f32 %v729_v38 }
 0x15d   : > { %v1204_v32 = vpop.eup %1203  ;;  %v1758_v30 = vpop.xlane.xlu1 %465  ;;  %1215 = vpow2.f32 %v745_v41 }
 0x15e   : > { %v1760_v40 = vpop.xlane.xlu2 %490  ;;  %v1206_v31 = vpop.eup %1205  ;;  %1217 = vpow2.f32 %v761_v44  ;;  %v620_v11 = vmax.f32 %v1748_v29, %v1758_v30 }
 0x15f   : > { %v1762_v45 = vpop.xlane.xlu0 %484  ;;  %v673_v46 = vadd.f32 %v1206_v31, %v1204_v32  ;;  %v1208_v47 = vpop.eup %1207 }
 0x160   : > { %v1210_v48 = vpop.eup %1209  ;;  %v622_v63 = vmax.f32 %v618_v55, %v1762_v45  ;;  %v624_v7 = vmax.f32 %v620_v11, %v1760_v40 }
 0x161   : > { %v689_v42 = vadd.f32 %v1208_v47, %v673_v46  ;;  %v1212_v49 = vpop.eup %1211 }
 0x162   : > { %v1214_v53 = vpop.eup %1213 }
 0x163   : > { %v705_v43 = vadd.f32 %v1210_v48, %v689_v42  ;;  %v1216_v54 = vpop.eup %1215 }
 0x164   : > { %v1218_v59 = vpop.eup %1217 }
 0x165   : > { %v721_v50 = vadd.f32 %v1212_v49, %v705_v43  ;;  %v510_v51 = vpop.xlane.xlu1 %509 }
 0x166   : > { %v1764_v52 = vpop.xlane.xlu2 %534  ;;  %v626_v14 = vmax.f32 %v622_v63, %v510_v51 }
 0x167   : > { %v1766_v57 = vpop.xlane.xlu0 %515  ;;  %v737_v58 = vadd.f32 %v1214_v53, %v721_v50 }
 0x168   : > { %v630_v13 = vmax.f32 %v626_v14, %v1764_v52  ;;  %v628_v6 = vmax.f32 %v624_v7, %v1766_v57 }
 0x169   : > { %v753_v56 = vadd.f32 %v1216_v54, %v737_v58 }
 0x16b   : > { %v769_v60 = vadd.f32 %v1218_v59, %v753_v56 }
 0x16d   : > { %1219 = vlog2.f32 %v769_v60  ;;  %v1772_v2 = vpop.xlane.xlu1 %540 }
 0x16e   : > { %v1774_v8 = vpop.xlane.xlu2 %565  ;;  %v632_v36 = vmax.f32 %v628_v6, %v1772_v2 }
 0x16f   : > { %v560_v10 = vpop.xlane.xlu0 %559 }
 0x170   : > { %v634_v24 = vmax.f32 %v630_v13, %v560_v10  ;;  %v636_v46 = vmax.f32 %v632_v36, %v1774_v8 }
 0x173   : > { %v1220_v5 = vpop.eup %1219 }
 0x174   : > { %v774_v22 = vmul.f32 0.6931472, %v1220_v5 }
 0x175   : > { %v585_v26 = vpop.xlane.xlu1 %584 }
 0x176   : > { %v781_v27 = vadd.f32 %v774_v22, %v1741_v23  ;;  %v638_v28 = vmax.f32 %v634_v24, %v585_v26  ;;  %v610_v37 = vpop.xlane.xlu2 %609  ;;  %v631_v23 = vmax.f32 %v627_v33, %v1737_v18 }
 0x177   : > { %v1792_v15 = vpop.xlane.xlu0 %590 }
 0x178   : > { %v810_v38 = vsub.f32 %v781_v27, %v1726_v0  ;;  %v1798_v39 = vmax.f32 %v638_v28, %v610_v37  ;;  %v640_v50 = vmax.f32 %v636_v46, %v1792_v15 }
 0x17a   : > { %v814_v32 = vmul.f32 %v1038_v35, %v810_v38  ;;  %v646_v31 = vsub.f32 %v1753_v16, %v1798_v39  ;;  %v662_v41 = vsub.f32 %v1750_v20, %v1798_v39  ;;  %v678_v0 = vsub.f32 %v1762_v45, %v1798_v39 }
 0x17b   : > { %v694_v47 = vsub.f32 %v510_v51, %v1798_v39  ;;  %v710_v48 = vsub.f32 %v1764_v52, %v1798_v39  ;;  %v726_v43 = vsub.f32 %v560_v10, %v1798_v39  ;;  %v635_v45 = vmax.f32 %v631_v23, %v1735_v12 }
 0x17c   : > { %819 = vst.msk [vmem:[%s1803_s15] sm:$0xff] %vm818_vm2, %v814_v32  ;;  %v651_v44 = vmul.f32 1.442695, %v646_v31  ;;  %v667_v42 = vmul.f32 1.442695, %v662_v41  ;;  %v742_v59 = vsub.f32 %v585_v26, %v1798_v39  ;;  %v758_v63 = vsub.f32 %v610_v37, %v1798_v39 }
 0x17d   : > { %v683_v49 = vmul.f32 1.442695, %v678_v0  ;;  %v1820_v20 = vpop.xlane.xlu1 %615  ;;  %v699_v53 = vmul.f32 1.442695, %v694_v47  ;;  %v639_v54 = vmax.f32 %v635_v45, %v1739_v21  ;;  %v715_v52 = vmul.f32 1.442695, %v710_v48 }
 0x17e   : > { %1221 = vpow2.f32 %v651_v44  ;;  %v1824_v51 = vmax.f32 %v640_v50, %v1820_v20  ;;  %v731_v56 = vmul.f32 1.442695, %v726_v43  ;;  %v747_v5 = vmul.f32 1.442695, %v742_v59 }
 0x17f   : > { %1223 = vpow2.f32 %v667_v42  ;;  %v1826_v58 = vpop.xlane.xlu0 %612  ;;  %v763_v25 = vmul.f32 1.442695, %v758_v63 }
 0x180   : > { %1225 = vpow2.f32 %v683_v49  ;;  %v648_v55 = vsub.f32 %v1748_v29, %v1824_v51  ;;  %v664_v60 = vsub.f32 %v1758_v30, %v1824_v51  ;;  %v680_v61 = vsub.f32 %v1760_v40, %v1824_v51 }
 0x181   : > { %v1838_v14 = vmax.f32 %v639_v54, %v1826_v58  ;;  %1227 = vpow2.f32 %v699_v53  ;;  %v696_v19 = vsub.f32 %v1766_v57, %v1824_v51  ;;  %v712_v30 = vsub.f32 %v1772_v2, %v1824_v51 }
 0x182   : > { %v655_v10 = vmul.f32 1.442695, %v648_v55  ;;  %v671_v11 = vmul.f32 1.442695, %v664_v60  ;;  %1229 = vpow2.f32 %v715_v52  ;;  %v687_v40 = vmul.f32 1.442695, %v680_v61 }
 0x183   : > { %1231 = vpow2.f32 %v731_v56  ;;  %v728_v22 = vsub.f32 %v1774_v8, %v1824_v51  ;;  %v703_v26 = vmul.f32 1.442695, %v696_v19  ;;  %v647_v57 = vsub.f32 %v1724_v62, %v1838_v14 }
 0x184   : > { %v1222_v13 = vpop.eup %1221  ;;  %1233 = vpow2.f32 %v655_v10  ;;  %v663_v27 = vsub.f32 %v1730_v3, %v1838_v14  ;;  %v719_v2 = vmul.f32 1.442695, %v712_v30  ;;  %v744_v33 = vsub.f32 %v1792_v15, %v1824_v51 }
 0x185   : > { %v1224_v7 = vpop.eup %1223  ;;  %1235 = vpow2.f32 %v671_v11  ;;  %v735_v8 = vmul.f32 1.442695, %v728_v22  ;;  %v679_v36 = vsub.f32 %v1728_v1, %v1838_v14  ;;  %v760_v23 = vsub.f32 %v1820_v20, %v1824_v51 }
 0x186   : > { %v674_v24 = vadd.f32 %v1224_v7, %v1222_v13  ;;  %v1226_v6 = vpop.eup %1225  ;;  %1237 = vpow2.f32 %v747_v5  ;;  %v653_v32 = vmul.f32 1.442695, %v647_v57  ;;  %v669_v31 = vmul.f32 1.442695, %v663_v27 }
 0x187   : > { %v1228_v35 = vpop.eup %1227  ;;  %1239 = vpow2.f32 %v687_v40  ;;  %v695_v41 = vsub.f32 %v1732_v9, %v1838_v14  ;;  %v751_v46 = vmul.f32 1.442695, %v744_v33  ;;  %v685_v1 = vmul.f32 1.442695, %v679_v36 }
 0x188   : > { %v690_v28 = vadd.f32 %v1226_v6, %v674_v24  ;;  %v1230_v37 = vpop.eup %1229  ;;  %1241 = vpow2.f32 %v763_v25  ;;  %v711_v44 = vsub.f32 %v1737_v18, %v1838_v14  ;;  %v767_v49 = vmul.f32 1.442695, %v760_v23 }
 0x189   : > { %v1232_v3 = vpop.eup %1231  ;;  %1243 = vpow2.f32 %v703_v26  ;;  %v701_v20 = vmul.f32 1.442695, %v695_v41  ;;  %v727_v9 = vsub.f32 %v1735_v12, %v1838_v14  ;;  %v743_v18 = vsub.f32 %v1739_v21, %v1838_v14 }
 0x18a   : > { %v706_v38 = vadd.f32 %v1228_v35, %v690_v28  ;;  %v1234_v15 = vpop.eup %1233  ;;  %1245 = vpow2.f32 %v719_v2  ;;  %v717_v56 = vmul.f32 1.442695, %v711_v44  ;;  %v759_v12 = vsub.f32 %v1826_v58, %v1838_v14 }
 0x18b   : > { %v1236_v47 = vpop.eup %1235  ;;  %1247 = vpow2.f32 %v735_v8  ;;  %v733_v63 = vmul.f32 1.442695, %v727_v9  ;;  %v749_v13 = vmul.f32 1.442695, %v743_v18  ;;  %v788_v40 = vadd.s32 8, %v1778_v17 }
 0x18c   : > { %v722_v0 = vadd.f32 %v1230_v37, %v706_v38  ;;  %v1238_v42 = vpop.eup %1237  ;;  %v676_v43 = vadd.f32 %v1236_v47, %v1234_v15  ;;  %1249 = vpow2.f32 %v653_v32  ;;  %v765_v22 = vmul.f32 1.442695, %v759_v12 }
 0x18d   : > { %v1240_v50 = vpop.eup %1239  ;;  %1251 = vpow2.f32 %v669_v31  ;;  %vm799_vm3 = vcmp.lt.s32.totalorder %v788_v40, %v1782_v4  ;;  %v790_v32 = vadd.s32 24, %v1778_v17 }
 0x18e   : > { %v738_v48 = vadd.f32 %v1232_v3, %v722_v0  ;;  %v1242_v45 = vpop.eup %1241  ;;  %v692_v54 = vadd.f32 %v1240_v50, %v676_v43  ;;  %1253 = vpow2.f32 %v751_v46  ;;  %v1039_v36 = vsel %vm799_vm3, 1.0, %v1438_v34 }
 0x18f   : > { %v1244_v52 = vpop.eup %1243  ;;  %1255 = vpow2.f32 %v685_v1  ;;  %vm801_vm4 = vcmp.lt.s32.totalorder %v790_v32, %v1782_v4  ;;  %v789_v1 = vadd.s32 16, %v1778_v17 }
 0x190   : > { %v754_v53 = vadd.f32 %v1238_v42, %v738_v48  ;;  %v1246_v59 = vpop.eup %1245  ;;  %v708_v60 = vadd.f32 %v1244_v52, %v692_v54  ;;  %1257 = vpow2.f32 %v767_v49  ;;  %v1041_v47 = vsel %vm801_vm4, 1.0, %v1438_v34 }
 0x191   : > { %v1248_v61 = vpop.eup %1247  ;;  %1259 = vpow2.f32 %v701_v20  ;;  %vm800_vm5 = vcmp.lt.s32.totalorder %v789_v1, %v1782_v4 }
 0x192   : > { %v770_v55 = vadd.f32 %v1242_v45, %v754_v53  ;;  %v1250_v10 = vpop.eup %1249  ;;  %v724_v11 = vadd.f32 %v1246_v59, %v708_v60  ;;  %v1040_v49 = vsel %vm800_vm5, 1.0, %v1438_v34 }
 0x193   : > { %v1252_v19 = vpop.eup %1251 }
 0x194   : > { %1261 = vlog2.f32 %v770_v55  ;;  %v1254_v5 = vpop.eup %1253  ;;  %v740_v30 = vadd.f32 %v1248_v61, %v724_v11  ;;  %v675_v7 = vadd.f32 %v1252_v19, %v1250_v10 }
 0x195   : > { %1263 = vpow2.f32 %v717_v56  ;;  %v1256_v21 = vpop.eup %1255 }
 0x196   : > { %1265 = vpow2.f32 %v733_v63  ;;  %v1258_v24 = vpop.eup %1257  ;;  %v756_v25 = vadd.f32 %v1254_v5, %v740_v30  ;;  %v691_v6 = vadd.f32 %v1256_v21, %v675_v7 }
 0x197   : > { %v1260_v26 = vpop.eup %1259  ;;  %1267 = vpow2.f32 %v749_v13 }
 0x198   : > { %v772_v57 = vadd.f32 %v1258_v24, %v756_v25  ;;  %v707_v27 = vadd.f32 %v1260_v26, %v691_v6  ;;  %1269 = vpow2.f32 %v765_v22 }
 0x19a   : > { %v1262_v58 = vpop.eup %1261  ;;  %1271 = vlog2.f32 %v772_v57 }
 0x19b   : > { %v1264_v28 = vpop.eup %1263  ;;  %v776_v2 = vmul.f32 0.6931472, %v1262_v58 }
 0x19c   : > { %v723_v33 = vadd.f32 %v1264_v28, %v707_v27  ;;  %v1266_v35 = vpop.eup %1265 }
 0x19d   : > { %v782_v8 = vadd.f32 %v776_v2, %v1798_v39  ;;  %v1268_v38 = vpop.eup %1267 }
 0x19e   : > { %v739_v37 = vadd.f32 %v1266_v35, %v723_v33  ;;  %v1270_v31 = vpop.eup %1269 }
 0x19f   : > { %v811_v23 = vsub.f32 %v782_v8, %v1753_v16 }
 0x1a0   : > { %v755_v3 = vadd.f32 %v1268_v38, %v739_v37  ;;  %v1272_v15 = vpop.eup %1271 }
 0x1a1   : > { %v815_v41 = vmul.f32 %v1039_v36, %v811_v23  ;;  %v780_v39 = vmul.f32 0.6931472, %v1272_v15 }
 0x1a2   : > { %v771_v0 = vadd.f32 %v1270_v31, %v755_v3 }
 0x1a3   : > { %820 = vst.msk [vmem:[%s1803_s15 + $0x8] sm:$0xff] %vm818_vm2, %v815_v41  ;;  %v784_v46 = vadd.f32 %v780_v39, %v1824_v51 }
 0x1a4   : > { %1273 = vlog2.f32 %v771_v0 }
 0x1a5   : > { %v813_v16 = vsub.f32 %v784_v46, %v1748_v29 }
 0x1a7   : > { %v817_v44 = vmul.f32 %v1041_v47, %v813_v16 }
 0x1a9   : > { %822 = vst.msk [vmem:[%s1803_s15 + $0x18] sm:$0xff] %vm818_vm2, %v817_v44 }
 0x1aa   : > { %v1274_v42 = vpop.eup %1273 }
 0x1ab   : > { %v778_v48 = vmul.f32 0.6931472, %v1274_v42 }
 0x1ad   : > { %v783_v43 = vadd.f32 %v778_v48, %v1838_v14 }
 0x1af   : > { %v812_v50 = vsub.f32 %v783_v43, %v1724_v62 }
 0x1b1   : > { %v816_v51 = vmul.f32 %v1040_v49, %v812_v50 }
 0x1b3   : > { %821 = vst.msk [vmem:[%s1803_s15 + $0x10] sm:$0xff] %vm818_vm2, %v816_v51 }
 0x1b4 PF: > { %s29_s0 = sadd.s32 1, %s1433_s0   ;;  %s1921_s16 = sld [smem:[#allocation13_spill]] }
 0x1b5   : > { %p26_p0 = scmp.ge.s32.totalorder %s29_s0, 4   ;;  %s1922_s10 = sld [smem:[#allocation12_spill]] }
 0x1b6   : > { %s1923_s22 = smov %s1417_s23  ;;  %s1924_s23 = smov %s1421_s24 }
 0x1b7   : > { %s1926_s25 = smov %s1429_s26  ;;  %28 = sbr.rel (!%p26_p0) target bundleno = 12 (0xc), region = 110 }
 0x1ba   : > { %s1925_s24 = smov %s1921_s16 }
 0x1bb   : > { %s1927_s26 = smov %s1922_s10 }
 0x1bc   :  { %853 = vsyncpa [#allocation5], 1 }
 0x1bd   :  { %855 = vsyncpa [#allocation5 + $0x1], 1 }
 0x1be   :  { %856 = vsyncpa [#allocation7], 1 }
 0x1bf   :  { %858 = vsyncpa [#allocation7 + $0x1], 1 }

</bundles_post_ra>
